<compile_context>
chip_gen: v7x
topology: tpu7x:2x2x1
jax: 0.10.0
libtpu: 0.0.40
codegen_flags: <defaults>
</compile_context>

<pallas_src>
import functools

import jax
import jax.numpy as jnp
from jax.experimental import pallas as pl
from jax.experimental.pallas import tpu as pltpu


_CO_BLK = 8            # sublane-dense output-channel chunk (vreg sublane count)
_REG_LANE_CAP = 2048   # lane cap so acc + operand slabs stay within the vreg file


def _round_up(n, m):
    return ((n + m - 1) // m) * m


def _global_conv_kernel(x_ref, w_ref, o_ref):
    """out[b, o, s] = sum_i x[b, i, s] * w[i, o, s] on one spatial (lane) tile.

    x_ref: [B,  Ci, TS]   real-space activations (f32 or bf16)
    w_ref: [Ci, Co, TS]   per-spatial-position mixing weights (f32 or bf16)
    o_ref: [B,  Co, TS]   f32 output

    Ci and Co are pre-padded to multiples of 8 by the wrapper, so every slab
    below is sublane-dense and every store is unmasked.
    """
    B, Ci, TS = x_ref.shape
    Co = w_ref.shape[1]
    # Static Python unroll (B, Ci, Co are small static ints): the LLO scheduler
    # sees everything, and compute is always f32 (safe on v5e: no bf16 VALU).
    for b in range(B):
        for oc in range(0, Co, _CO_BLK):
            osl = slice(oc, oc + _CO_BLK)
            # Live state: one [8, TS] f32 accumulator + the current operands.
            acc = (x_ref[b, 0:1, :].astype(jnp.float32)          # [1, TS]
                   * w_ref[0, osl, :].astype(jnp.float32))       # [8, TS]
            for i in range(1, Ci):
                acc = acc + (x_ref[b, i:i + 1, :].astype(jnp.float32)
                             * w_ref[i, osl, :].astype(jnp.float32))
            o_ref[b, osl, :] = acc.astype(o_ref.dtype)           # dense [8, TS] store


def _choose_tile_s(S, per_lane_bytes, vmem_budget_bytes, lane_cap):
    """Largest lane tile that divides S, is 128-aligned (unless it is the full
    extent), fits the VMEM budget, and keeps register pressure bounded.
    Prefers >=2 grid steps so the single 'parallel' S axis can shard across
    v7x's two TensorCores and overlap DMA with compute."""
    cap = int(min(vmem_budget_bytes // max(per_lane_bytes, 1), lane_cap))
    cap = max(cap, 128)
    if S <= cap:
        tile = S
    elif S % 128 == 0:
        tile = 128
        t = 256
        while t <= cap:
            if S % t == 0:
                tile = t
            t += 128
    else:
        # Ragged S larger than the cap: fall back to one full-extent block.
        # TODO(synk): mask a ragged last tile instead of a single big block.
        tile = S
    if tile == S and S % 256 == 0 and (S // 2) >= 512 and (S // 2) <= cap:
        tile = S // 2          # >=2 grid steps -> work for both v7x TCs
    return tile


def compl_mul3d_pallas(x_real, weights, *, stream_bf16=False,
                       vmem_tile_budget_bytes=24 * 1024 * 1024):
    """Pallas implementation of torch.einsum('bixyz,ioxyz->boxyz', x, W)."""
    B, Ci, X, Y, Z = x_real.shape
    Ci_w, Co = weights.shape[0], weights.shape[1]
    assert Ci_w == Ci
    S = X * Y * Z

    # Pad channels to a multiple of 8 so the sublane axis of every vreg is
    # fully used and output stores are unmasked (matters when Ci/Co < 8; a
    # no-op for realistic FNO widths >= 8).  Zero-padded channels contribute 0.
    Cip, Cop = _round_up(Ci, _CO_BLK), _round_up(Co, _CO_BLK)

    in_dtype = jnp.bfloat16 if stream_bf16 else jnp.float32
    x_flat = x_real.reshape(B, Ci, S).astype(in_dtype)
    w_flat = weights.reshape(Ci, Co, S).astype(in_dtype)
    if Cip != Ci:
        x_flat = jnp.pad(x_flat, ((0, 0), (0, Cip - Ci), (0, 0)))
        w_flat = jnp.pad(w_flat, ((0, Cip - Ci), (0, 0), (0, 0)))
    if Cop != Co:
        w_flat = jnp.pad(w_flat, ((0, 0), (0, Cop - Co), (0, 0)))

    in_itemsize = jnp.dtype(in_dtype).itemsize
    # VMEM per lane of tile: double-buffered inputs + double-buffered f32 output.
    per_lane_bytes = (2 * (B * Cip + Cip * Cop) * in_itemsize
                      + 2 * (B * Cop) * 4)
    tile_s = _choose_tile_s(S, per_lane_bytes, vmem_tile_budget_bytes,
                            _REG_LANE_CAP)
    grid = (S // tile_s,)

    flops = 2 * B * Ci * Co * S
    bytes_accessed = ((B * Cip + Cip * Cop) * S * in_itemsize
                      + B * Cop * S * 4)

    out_flat = pl.pallas_call(
        _global_conv_kernel,
        out_shape=jax.ShapeDtypeStruct((B, Cop, S), jnp.float32),
        grid=grid,
        in_specs=[
            pl.BlockSpec((B, Cip, tile_s), lambda s: (0, 0, s)),
            pl.BlockSpec((Cip, Cop, tile_s), lambda s: (0, 0, s)),
        ],
        out_specs=pl.BlockSpec((B, Cop, tile_s), lambda s: (0, 0, s)),
        compiler_params=pltpu.CompilerParams(
            dimension_semantics=("parallel",),
            vmem_limit_bytes=48 * 1024 * 1024,   # < 64 MiB: safe on v7x too
        ),
        cost_estimate=pl.CostEstimate(flops=flops, transcendentals=0,
                                      bytes_accessed=bytes_accessed),
    )(x_flat, w_flat)

    return out_flat[:, :Co, :].reshape(B, Co, X, Y, Z)


@functools.partial(jax.jit, static_argnums=(2, 3, 4, 5))
def h_global_conv_forward(x, weights, modes1, modes2, modes3, stream_bf16=False):
    """Forward pass of H_GobalConv.

    x:       complex64 [B, Cin, D1, D2, D3half]
    weights: float32   [Cin, Cout, 2*m1, 2*m2, 2*m3-2]
    returns: complex64 [B, Cin(=Cout), D1, D2, D3half]
    """
    m1, m2, m3 = modes1, modes2, modes3

    # Corner extraction + concat (pure indexing glue, stays in JAX).
    x1 = x[:, :, :m1, :m2, :m3]
    x2 = x[:, :, -m1:, :m2, :m3]
    x3 = x[:, :, :m1, -m2:, :m3]
    x4 = x[:, :, -m1:, -m2:, :m3]
    x11 = jnp.concatenate([x1, x2], axis=-3)
    x22 = jnp.concatenate([x3, x4], axis=-3)
    x_mode = jnp.concatenate([x11, x22], axis=-2)     # [B, Ci, 2m1, 2m2, m3] complex

    # TODO(synk): FFTs have no clean Pallas equivalent; kept as XLA ops.
    x_mode = jnp.fft.irfftn(x_mode, axes=(-3, -2, -1))  # [B, Ci, 2m1, 2m2, 2m3-2] f32

    # Hot path: per-spatial-position channel mixing -> Pallas kernel.
    x_mode = compl_mul3d_pallas(x_mode, weights, stream_bf16=stream_bf16)

    x_mode = jnp.fft.rfftn(x_mode, axes=(-3, -2, -1))    # [B, Co, 2m1, 2m2, m3] complex

    # Scatter corners back into a zero-padded full-spectrum tensor.
    # (Requires Cout == Cin, exactly like the PyTorch module as written.)
    x_pad = jnp.zeros_like(x)
    x_mode = x_mode.astype(x.dtype)
    x_pad = x_pad.at[:, :, :m1, :m2, :m3].set(x_mode[:, :, :m1, :m2, :m3])
    x_pad = x_pad.at[:, :, -m1:, :m2, :m3].set(x_mode[:, :, -m1:, :m2, :m3])
    x_pad = x_pad.at[:, :, :m1, -m2:, :m3].set(x_mode[:, :, :m1, -m2:, :m3])
    x_pad = x_pad.at[:, :, -m1:, -m2:, :m3].set(x_mode[:, :, -m1:, -m2:, :m3])
    return x_pad


if __name__ == "__main__":
    key = jax.random.PRNGKey(0)
    k_re, k_im, k_w = jax.random.split(key, 3)

    # Small shapes consistent with the module (in_channels must equal
    # out_channels for the PyTorch forward to type-check, as written).
    B, Cin, Cout = 2, 4, 4
    m1 = m2 = m3 = 4
    D1, D2 = 16, 16
    D3half = 9                      # rfft of a length-16 axis -> 9 bins

    x_re = jax.random.normal(k_re, (B, Cin, D1, D2, D3half), jnp.float32)
    x_im = jax.random.normal(k_im, (B, Cin, D1, D2, D3half), jnp.float32)
    x = (x_re + 1j * x_im).astype(jnp.complex64)

    scale = 0.001                   # final value of self.scale in __init__
    weights = scale * jax.random.uniform(
        k_w, (Cin, Cout, 2 * m1, 2 * m2, 2 * m3 - 2), jnp.float32)

    # Quick in-line correctness check of the Pallas contraction itself.
    x_real = jnp.fft.irfftn(
        jnp.concatenate(
            [jnp.concatenate([x[:, :, :m1, :m2, :m3], x[:, :, -m1:, :m2, :m3]], axis=-3),
             jnp.concatenate([x[:, :, :m1, -m2:, :m3], x[:, :, -m1:, -m2:, :m3]], axis=-3)],
            axis=-2),
        axes=(-3, -2, -1))
    got = compl_mul3d_pallas(x_real, weights)
    ref = jnp.einsum('bixyz,ioxyz->boxyz', x_real, weights)
    assert jnp.allclose(got, ref, rtol=1e-3, atol=1e-5), "pallas contraction mismatch"

    out = h_global_conv_forward(x, weights, m1, m2, m3)
    jax.block_until_ready(out)

    assert out.shape == x.shape and out.dtype == jnp.complex64
    print("KERNEL_OK")
</pallas_src>

<mosaic_0001>
module attributes {stable_mosaic.version = 11 : i64} {
  func.func @_global_conv_kernel(%arg0: i32, %arg1: memref<2x8x384xf32, #tpu.memory_space<vmem>>, %arg2: memref<8x8x384xf32, #tpu.memory_space<vmem>>, %arg3: memref<2x8x384xf32, #tpu.memory_space<vmem>>) attributes {dimension_semantics = [#tpu.dimension_semantics<parallel>], iteration_bounds = array<i64: 1>, scalar_prefetch = 0 : i64, scratch_operands = 0 : i64, tpu.core_type = #tpu.core_type<tc>, window_params = [{transform_indices = @transform_0, window_bounds = array<i64: 2, 8, 384>}, {transform_indices = @transform_1, window_bounds = array<i64: 8, 8, 384>}, {transform_indices = @transform_2, window_bounds = array<i64: 2, 8, 384>}]} {
    %c0 = arith.constant 0 : index
    %c0_0 = arith.constant 0 : index
    %c0_1 = arith.constant 0 : index
    %0 = vector.load %arg1[%c0, %c0_0, %c0_1] : memref<2x8x384xf32, #tpu.memory_space<vmem>>, vector<1x1x384xf32>
    %1 = vector.shape_cast %0 : vector<1x1x384xf32> to vector<1x384xf32>
    %c0_2 = arith.constant 0 : index
    %c0_3 = arith.constant 0 : index
    %c0_4 = arith.constant 0 : index
    %2 = vector.load %arg2[%c0_2, %c0_3, %c0_4] : memref<8x8x384xf32, #tpu.memory_space<vmem>>, vector<1x8x384xf32>
    %3 = vector.shape_cast %2 : vector<1x8x384xf32> to vector<8x384xf32>
    %4 = vector.broadcast %1 : vector<1x384xf32> to vector<8x384xf32>
    %5 = arith.mulf %4, %3 : vector<8x384xf32>
    %c0_5 = arith.constant 0 : index
    %c1 = arith.constant 1 : index
    %c0_6 = arith.constant 0 : index
    %6 = vector.load %arg1[%c0_5, %c1, %c0_6] : memref<2x8x384xf32, #tpu.memory_space<vmem>>, vector<1x1x384xf32>
    %7 = vector.shape_cast %6 : vector<1x1x384xf32> to vector<1x384xf32>
    %c1_7 = arith.constant 1 : index
    %c0_8 = arith.constant 0 : index
    %c0_9 = arith.constant 0 : index
    %8 = vector.load %arg2[%c1_7, %c0_8, %c0_9] : memref<8x8x384xf32, #tpu.memory_space<vmem>>, vector<1x8x384xf32>
    %9 = vector.shape_cast %8 : vector<1x8x384xf32> to vector<8x384xf32>
    %10 = vector.broadcast %7 : vector<1x384xf32> to vector<8x384xf32>
    %11 = arith.mulf %10, %9 : vector<8x384xf32>
    %12 = arith.addf %5, %11 : vector<8x384xf32>
    %c0_10 = arith.constant 0 : index
    %c2 = arith.constant 2 : index
    %c0_11 = arith.constant 0 : index
    %13 = vector.load %arg1[%c0_10, %c2, %c0_11] : memref<2x8x384xf32, #tpu.memory_space<vmem>>, vector<1x1x384xf32>
    %14 = vector.shape_cast %13 : vector<1x1x384xf32> to vector<1x384xf32>
    %c2_12 = arith.constant 2 : index
    %c0_13 = arith.constant 0 : index
    %c0_14 = arith.constant 0 : index
    %15 = vector.load %arg2[%c2_12, %c0_13, %c0_14] : memref<8x8x384xf32, #tpu.memory_space<vmem>>, vector<1x8x384xf32>
    %16 = vector.shape_cast %15 : vector<1x8x384xf32> to vector<8x384xf32>
    %17 = vector.broadcast %14 : vector<1x384xf32> to vector<8x384xf32>
    %18 = arith.mulf %17, %16 : vector<8x384xf32>
    %19 = arith.addf %12, %18 : vector<8x384xf32>
    %c0_15 = arith.constant 0 : index
    %c3 = arith.constant 3 : index
    %c0_16 = arith.constant 0 : index
    %20 = vector.load %arg1[%c0_15, %c3, %c0_16] : memref<2x8x384xf32, #tpu.memory_space<vmem>>, vector<1x1x384xf32>
    %21 = vector.shape_cast %20 : vector<1x1x384xf32> to vector<1x384xf32>
    %c3_17 = arith.constant 3 : index
    %c0_18 = arith.constant 0 : index
    %c0_19 = arith.constant 0 : index
    %22 = vector.load %arg2[%c3_17, %c0_18, %c0_19] : memref<8x8x384xf32, #tpu.memory_space<vmem>>, vector<1x8x384xf32>
    %23 = vector.shape_cast %22 : vector<1x8x384xf32> to vector<8x384xf32>
    %24 = vector.broadcast %21 : vector<1x384xf32> to vector<8x384xf32>
    %25 = arith.mulf %24, %23 : vector<8x384xf32>
    %26 = arith.addf %19, %25 : vector<8x384xf32>
    %c0_20 = arith.constant 0 : index
    %c4 = arith.constant 4 : index
    %c0_21 = arith.constant 0 : index
    %27 = vector.load %arg1[%c0_20, %c4, %c0_21] : memref<2x8x384xf32, #tpu.memory_space<vmem>>, vector<1x1x384xf32>
    %28 = vector.shape_cast %27 : vector<1x1x384xf32> to vector<1x384xf32>
    %c4_22 = arith.constant 4 : index
    %c0_23 = arith.constant 0 : index
    %c0_24 = arith.constant 0 : index
    %29 = vector.load %arg2[%c4_22, %c0_23, %c0_24] : memref<8x8x384xf32, #tpu.memory_space<vmem>>, vector<1x8x384xf32>
    %30 = vector.shape_cast %29 : vector<1x8x384xf32> to vector<8x384xf32>
    %31 = vector.broadcast %28 : vector<1x384xf32> to vector<8x384xf32>
    %32 = arith.mulf %31, %30 : vector<8x384xf32>
    %33 = arith.addf %26, %32 : vector<8x384xf32>
    %c0_25 = arith.constant 0 : index
    %c5 = arith.constant 5 : index
    %c0_26 = arith.constant 0 : index
    %34 = vector.load %arg1[%c0_25, %c5, %c0_26] : memref<2x8x384xf32, #tpu.memory_space<vmem>>, vector<1x1x384xf32>
    %35 = vector.shape_cast %34 : vector<1x1x384xf32> to vector<1x384xf32>
    %c5_27 = arith.constant 5 : index
    %c0_28 = arith.constant 0 : index
    %c0_29 = arith.constant 0 : index
    %36 = vector.load %arg2[%c5_27, %c0_28, %c0_29] : memref<8x8x384xf32, #tpu.memory_space<vmem>>, vector<1x8x384xf32>
    %37 = vector.shape_cast %36 : vector<1x8x384xf32> to vector<8x384xf32>
    %38 = vector.broadcast %35 : vector<1x384xf32> to vector<8x384xf32>
    %39 = arith.mulf %38, %37 : vector<8x384xf32>
    %40 = arith.addf %33, %39 : vector<8x384xf32>
    %c0_30 = arith.constant 0 : index
    %c6 = arith.constant 6 : index
    %c0_31 = arith.constant 0 : index
    %41 = vector.load %arg1[%c0_30, %c6, %c0_31] : memref<2x8x384xf32, #tpu.memory_space<vmem>>, vector<1x1x384xf32>
    %42 = vector.shape_cast %41 : vector<1x1x384xf32> to vector<1x384xf32>
    %c6_32 = arith.constant 6 : index
    %c0_33 = arith.constant 0 : index
    %c0_34 = arith.constant 0 : index
    %43 = vector.load %arg2[%c6_32, %c0_33, %c0_34] : memref<8x8x384xf32, #tpu.memory_space<vmem>>, vector<1x8x384xf32>
    %44 = vector.shape_cast %43 : vector<1x8x384xf32> to vector<8x384xf32>
    %45 = vector.broadcast %42 : vector<1x384xf32> to vector<8x384xf32>
    %46 = arith.mulf %45, %44 : vector<8x384xf32>
    %47 = arith.addf %40, %46 : vector<8x384xf32>
    %c0_35 = arith.constant 0 : index
    %c7 = arith.constant 7 : index
    %c0_36 = arith.constant 0 : index
    %48 = vector.load %arg1[%c0_35, %c7, %c0_36] : memref<2x8x384xf32, #tpu.memory_space<vmem>>, vector<1x1x384xf32>
    %49 = vector.shape_cast %48 : vector<1x1x384xf32> to vector<1x384xf32>
    %c7_37 = arith.constant 7 : index
    %c0_38 = arith.constant 0 : index
    %c0_39 = arith.constant 0 : index
    %50 = vector.load %arg2[%c7_37, %c0_38, %c0_39] : memref<8x8x384xf32, #tpu.memory_space<vmem>>, vector<1x8x384xf32>
    %51 = vector.shape_cast %50 : vector<1x8x384xf32> to vector<8x384xf32>
    %52 = vector.broadcast %49 : vector<1x384xf32> to vector<8x384xf32>
    %53 = arith.mulf %52, %51 : vector<8x384xf32>
    %54 = arith.addf %47, %53 : vector<8x384xf32>
    %c0_40 = arith.constant 0 : index
    %c0_41 = arith.constant 0 : index
    %c0_42 = arith.constant 0 : index
    %55 = vector.load %arg3[%c0_40, %c0_41, %c0_42] : memref<2x8x384xf32, #tpu.memory_space<vmem>>, vector<1x8x384xf32>
    %56 = vector.shape_cast %55 : vector<1x8x384xf32> to vector<8x384xf32>
    %57 = vector.shape_cast %54 : vector<8x384xf32> to vector<1x8x384xf32>
    tpu.vector_store %arg3[%c0_40, %c0_41, %c0_42], %57 {strides = array<i32>} : memref<2x8x384xf32, #tpu.memory_space<vmem>>, vector<1x8x384xf32>,
    %c1_43 = arith.constant 1 : index
    %c0_44 = arith.constant 0 : index
    %c0_45 = arith.constant 0 : index
    %58 = vector.load %arg1[%c1_43, %c0_44, %c0_45] : memref<2x8x384xf32, #tpu.memory_space<vmem>>, vector<1x1x384xf32>
    %59 = vector.shape_cast %58 : vector<1x1x384xf32> to vector<1x384xf32>
    %c0_46 = arith.constant 0 : index
    %c0_47 = arith.constant 0 : index
    %c0_48 = arith.constant 0 : index
    %60 = vector.load %arg2[%c0_46, %c0_47, %c0_48] : memref<8x8x384xf32, #tpu.memory_space<vmem>>, vector<1x8x384xf32>
    %61 = vector.shape_cast %60 : vector<1x8x384xf32> to vector<8x384xf32>
    %62 = vector.broadcast %59 : vector<1x384xf32> to vector<8x384xf32>
    %63 = arith.mulf %62, %61 : vector<8x384xf32>
    %c1_49 = arith.constant 1 : index
    %c1_50 = arith.constant 1 : index
    %c0_51 = arith.constant 0 : index
    %64 = vector.load %arg1[%c1_49, %c1_50, %c0_51] : memref<2x8x384xf32, #tpu.memory_space<vmem>>, vector<1x1x384xf32>
    %65 = vector.shape_cast %64 : vector<1x1x384xf32> to vector<1x384xf32>
    %c1_52 = arith.constant 1 : index
    %c0_53 = arith.constant 0 : index
    %c0_54 = arith.constant 0 : index
    %66 = vector.load %arg2[%c1_52, %c0_53, %c0_54] : memref<8x8x384xf32, #tpu.memory_space<vmem>>, vector<1x8x384xf32>
    %67 = vector.shape_cast %66 : vector<1x8x384xf32> to vector<8x384xf32>
    %68 = vector.broadcast %65 : vector<1x384xf32> to vector<8x384xf32>
    %69 = arith.mulf %68, %67 : vector<8x384xf32>
    %70 = arith.addf %63, %69 : vector<8x384xf32>
    %c1_55 = arith.constant 1 : index
    %c2_56 = arith.constant 2 : index
    %c0_57 = arith.constant 0 : index
    %71 = vector.load %arg1[%c1_55, %c2_56, %c0_57] : memref<2x8x384xf32, #tpu.memory_space<vmem>>, vector<1x1x384xf32>
    %72 = vector.shape_cast %71 : vector<1x1x384xf32> to vector<1x384xf32>
    %c2_58 = arith.constant 2 : index
    %c0_59 = arith.constant 0 : index
    %c0_60 = arith.constant 0 : index
    %73 = vector.load %arg2[%c2_58, %c0_59, %c0_60] : memref<8x8x384xf32, #tpu.memory_space<vmem>>, vector<1x8x384xf32>
    %74 = vector.shape_cast %73 : vector<1x8x384xf32> to vector<8x384xf32>
    %75 = vector.broadcast %72 : vector<1x384xf32> to vector<8x384xf32>
    %76 = arith.mulf %75, %74 : vector<8x384xf32>
    %77 = arith.addf %70, %76 : vector<8x384xf32>
    %c1_61 = arith.constant 1 : index
    %c3_62 = arith.constant 3 : index
    %c0_63 = arith.constant 0 : index
    %78 = vector.load %arg1[%c1_61, %c3_62, %c0_63] : memref<2x8x384xf32, #tpu.memory_space<vmem>>, vector<1x1x384xf32>
    %79 = vector.shape_cast %78 : vector<1x1x384xf32> to vector<1x384xf32>
    %c3_64 = arith.constant 3 : index
    %c0_65 = arith.constant 0 : index
    %c0_66 = arith.constant 0 : index
    %80 = vector.load %arg2[%c3_64, %c0_65, %c0_66] : memref<8x8x384xf32, #tpu.memory_space<vmem>>, vector<1x8x384xf32>
    %81 = vector.shape_cast %80 : vector<1x8x384xf32> to vector<8x384xf32>
    %82 = vector.broadcast %79 : vector<1x384xf32> to vector<8x384xf32>
    %83 = arith.mulf %82, %81 : vector<8x384xf32>
    %84 = arith.addf %77, %83 : vector<8x384xf32>
    %c1_67 = arith.constant 1 : index
    %c4_68 = arith.constant 4 : index
    %c0_69 = arith.constant 0 : index
    %85 = vector.load %arg1[%c1_67, %c4_68, %c0_69] : memref<2x8x384xf32, #tpu.memory_space<vmem>>, vector<1x1x384xf32>
    %86 = vector.shape_cast %85 : vector<1x1x384xf32> to vector<1x384xf32>
    %c4_70 = arith.constant 4 : index
    %c0_71 = arith.constant 0 : index
    %c0_72 = arith.constant 0 : index
    %87 = vector.load %arg2[%c4_70, %c0_71, %c0_72] : memref<8x8x384xf32, #tpu.memory_space<vmem>>, vector<1x8x384xf32>
    %88 = vector.shape_cast %87 : vector<1x8x384xf32> to vector<8x384xf32>
    %89 = vector.broadcast %86 : vector<1x384xf32> to vector<8x384xf32>
    %90 = arith.mulf %89, %88 : vector<8x384xf32>
    %91 = arith.addf %84, %90 : vector<8x384xf32>
    %c1_73 = arith.constant 1 : index
    %c5_74 = arith.constant 5 : index
    %c0_75 = arith.constant 0 : index
    %92 = vector.load %arg1[%c1_73, %c5_74, %c0_75] : memref<2x8x384xf32, #tpu.memory_space<vmem>>, vector<1x1x384xf32>
    %93 = vector.shape_cast %92 : vector<1x1x384xf32> to vector<1x384xf32>
    %c5_76 = arith.constant 5 : index
    %c0_77 = arith.constant 0 : index
    %c0_78 = arith.constant 0 : index
    %94 = vector.load %arg2[%c5_76, %c0_77, %c0_78] : memref<8x8x384xf32, #tpu.memory_space<vmem>>, vector<1x8x384xf32>
    %95 = vector.shape_cast %94 : vector<1x8x384xf32> to vector<8x384xf32>
    %96 = vector.broadcast %93 : vector<1x384xf32> to vector<8x384xf32>
    %97 = arith.mulf %96, %95 : vector<8x384xf32>
    %98 = arith.addf %91, %97 : vector<8x384xf32>
    %c1_79 = arith.constant 1 : index
    %c6_80 = arith.constant 6 : index
    %c0_81 = arith.constant 0 : index
    %99 = vector.load %arg1[%c1_79, %c6_80, %c0_81] : memref<2x8x384xf32, #tpu.memory_space<vmem>>, vector<1x1x384xf32>
    %100 = vector.shape_cast %99 : vector<1x1x384xf32> to vector<1x384xf32>
    %c6_82 = arith.constant 6 : index
    %c0_83 = arith.constant 0 : index
    %c0_84 = arith.constant 0 : index
    %101 = vector.load %arg2[%c6_82, %c0_83, %c0_84] : memref<8x8x384xf32, #tpu.memory_space<vmem>>, vector<1x8x384xf32>
    %102 = vector.shape_cast %101 : vector<1x8x384xf32> to vector<8x384xf32>
    %103 = vector.broadcast %100 : vector<1x384xf32> to vector<8x384xf32>
    %104 = arith.mulf %103, %102 : vector<8x384xf32>
    %105 = arith.addf %98, %104 : vector<8x384xf32>
    %c1_85 = arith.constant 1 : index
    %c7_86 = arith.constant 7 : index
    %c0_87 = arith.constant 0 : index
    %106 = vector.load %arg1[%c1_85, %c7_86, %c0_87] : memref<2x8x384xf32, #tpu.memory_space<vmem>>, vector<1x1x384xf32>
    %107 = vector.shape_cast %106 : vector<1x1x384xf32> to vector<1x384xf32>
    %c7_88 = arith.constant 7 : index
    %c0_89 = arith.constant 0 : index
    %c0_90 = arith.constant 0 : index
    %108 = vector.load %arg2[%c7_88, %c0_89, %c0_90] : memref<8x8x384xf32, #tpu.memory_space<vmem>>, vector<1x8x384xf32>
    %109 = vector.shape_cast %108 : vector<1x8x384xf32> to vector<8x384xf32>
    %110 = vector.broadcast %107 : vector<1x384xf32> to vector<8x384xf32>
    %111 = arith.mulf %110, %109 : vector<8x384xf32>
    %112 = arith.addf %105, %111 : vector<8x384xf32>
    %c1_91 = arith.constant 1 : index
    %c0_92 = arith.constant 0 : index
    %c0_93 = arith.constant 0 : index
    %113 = vector.load %arg3[%c1_91, %c0_92, %c0_93] : memref<2x8x384xf32, #tpu.memory_space<vmem>>, vector<1x8x384xf32>
    %114 = vector.shape_cast %113 : vector<1x8x384xf32> to vector<8x384xf32>
    %115 = vector.shape_cast %112 : vector<8x384xf32> to vector<1x8x384xf32>
    tpu.vector_store %arg3[%c1_91, %c0_92, %c0_93], %115 {strides = array<i32>} : memref<2x8x384xf32, #tpu.memory_space<vmem>>, vector<1x8x384xf32>,
    return
  }
  func.func @transform_0(%arg0: i32) -> (i32, i32, i32) {
    %c0_i32 = arith.constant 0 : i32
    %c0_i32_0 = arith.constant 0 : i32
    %c0_i32_1 = arith.constant 0 : i32
    return %c0_i32, %c0_i32_0, %arg0 : i32, i32, i32
  }
  func.func @transform_1(%arg0: i32) -> (i32, i32, i32) {
    %c0_i32 = arith.constant 0 : i32
    %c0_i32_0 = arith.constant 0 : i32
    %c0_i32_1 = arith.constant 0 : i32
    return %c0_i32, %c0_i32_0, %arg0 : i32, i32, i32
  }
  func.func @transform_2(%arg0: i32) -> (i32, i32, i32) {
    %c0_i32 = arith.constant 0 : i32
    %c0_i32_0 = arith.constant 0 : i32
    %c0_i32_1 = arith.constant 0 : i32
    return %c0_i32, %c0_i32_0, %arg0 : i32, i32, i32
  }
}

</mosaic_0001>

<bundles_post_ra>
// kernel: tpu_custom_call.1
= control target key start
LH: loop header
LB: loop body
LE: loop exit
PB: predicated region body
PF: predicated region fallthrough
CT: control target
= control target key end

     0   :  { %7 = vsyncpa [#allocation3], 0  ;;  %s871_s0 = inlined_call_operand.hbm [shape: f32[2,8,384], index: 0, kind: input, shape index: {}]   ;;  %s872_s1 = inlined_call_operand.hbm [shape: f32[8,8,384], index: 1, kind: input, shape index: {}]   ;;  %s873_s2 = inlined_call_operand.hbm [shape: f32[2,8,384], index: 2, kind: output, shape index: {}]  }
   0x1   :  { %8 = vsyncpa [#allocation6], 0 }
   0x2   :  { %9 = vsyncpa [#allocation4], 0  ;;  %s581_s9 = smov [#allocation2]   ;;  %s509_s13 = scalar_lea.hbm %s871_s0, 768 }
   0x3   :  { %s15_s10 = sshll.u32 %s581_s9, 4  ;;  %p510_p0 = scmp.ne.s32.totalorder %s871_s0, %s509_s13  ;;  %s16_s10 = int_to_ptr.vmem [resolvable:$true] %s15_s10 }
   0x4   :  { %p513_p1 = scmp.lt.u32.totalorder %s509_s13, %s871_s0 }
   0x6   :  { %p515_p2 = pnand %p513_p1, %p510_p0 }
   0x8   :  { %518 = shalt.err (!%p515_p2)
}
   0x9   :  { %s519_s18 = scalar_lea.vmem %s16_s10, 768  ;;  %p524_p4 = scmp.lt.s32.totalorder %s16_s10, %s16_s10 }
   0xa   :  { %p520_p3 = scmp.ne.s32.totalorder %s16_s10, %s519_s18  ;;  %p525_p5 = scmp.lt.s32.totalorder %s519_s18, %s519_s18 }
   0xc   :  { %p526_p6 = por %p525_p5, %p524_p4 }
   0xe   :  { %p527_p7 = pnand %p526_p6, %p520_p3 }
  0x10   :  { %530 = shalt.err (!%p527_p7)
}
  0x11   :  { %s582_s19 = smov 384   ;;  %s583_s20 = smov 24  }
  0x12   :  { %21 = dma.hbm_to_vmem [thread:$0]  %s871_s0, 768, %s16_s10, [#allocation3], %s582_s19, %s582_s19, %s583_s20  }
  0x13   :  { %s584_s23 = smov [#allocation5]   ;;  %s531_s27 = scalar_lea.hbm %s872_s1, 3072 }
  0x14   :  { %s27_s24 = sshll.u32 %s584_s23, 4  ;;  %p532_p8 = scmp.ne.s32.totalorder %s872_s1, %s531_s27  ;;  %s28_s24 = int_to_ptr.vmem [resolvable:$true] %s27_s24 }
  0x15   :  { %p535_p9 = scmp.lt.u32.totalorder %s531_s27, %s872_s1 }
  0x17   :  { %p537_p10 = pnand %p535_p9, %p532_p8 }
  0x19   :  { %540 = shalt.err (!%p537_p10)
}
  0x1a   :  { %s541_s4 = scalar_lea.vmem %s28_s24, 3072  ;;  %p546_p12 = scmp.lt.s32.totalorder %s28_s24, %s28_s24 }
  0x1b   :  { %p542_p11 = scmp.ne.s32.totalorder %s28_s24, %s541_s4  ;;  %p547_p13 = scmp.lt.s32.totalorder %s541_s4, %s541_s4 }
  0x1d   :  { %p548_p0 = por %p547_p13, %p546_p12 }
  0x1f   :  { %p549_p1 = pnand %p548_p0, %p542_p11 }
  0x21   :  { %552 = shalt.err (!%p549_p1)
}
  0x22   :  { %33 = dma.hbm_to_vmem [thread:$0]  %s872_s1, 3072, %s28_s24, [#allocation6], %s582_s19, %s582_s19, %s583_s20  }
  0x23   :  { %575 = dma.done.wait [#allocation3], 768  }
  0x24   :  { %576 = vsyncadd [#allocation3], 4294966528 }
  0x25   :  { %577 = dma.done.wait [#allocation6], 3072  }
  0x26   :  { %578 = vsyncadd [#allocation6], 4294964224  ;;  %v45_v0 = vlaneseq  ;;  %v637_v5 = vld [vmem:[#allocation2] ss:$8 sm:$0x7]  ;;  %v656_v16 = vld [vmem:[#allocation5 + $0x48] sm:$0xff] }
  0x27   :  { %v639_v6 = vld [vmem:[#allocation5] sm:$0xff]  ;;  %v641_v7 = vld [vmem:[#allocation5 + $0x18] sm:$0xff]  ;;  %v650_v13 = vld [vmem:[#allocation5 + $0x30] sm:$0xff]  ;;  %s585_s1 = smov [#allocation7]  }
  0x28   :  { %v46_v1 = vshrl.u32 %v45_v0, 7  ;;  %v64_v9 = vld [vmem:[#allocation2 + $0x1] ss:$8 sm:$0x7]  ;;  %v691_v36 = vld [vmem:[#allocation5 + $0xa8] sm:$0xff]  ;;  %s484_s6 = sshll.u32 %s585_s1, 4  ;;  %s485_s6 = int_to_ptr.vmem [resolvable:$true] %s484_s6 }
  0x29   :  { %v645_v10 = vld [vmem:[#allocation2 + $0x2] ss:$8 sm:$0x7]  ;;  %v654_v15 = vld [vmem:[#allocation2 + $0x3] ss:$8 sm:$0x7]  ;;  %p558_p3 = scmp.lt.s32.totalorder %s485_s6, %s485_s6 }
  0x2a   :  { %v631_v2 = vsub.s32 0, %v46_v1  ;;  %v633_v3 = vsub.s32 1, %v46_v1  ;;  %v635_v4 = vsub.s32 2, %v46_v1  ;;  %v664_v21 = vld [vmem:[#allocation2 + $0x4] ss:$8 sm:$0x7] }
  0x2b   :  { %v666_v22 = vld [vmem:[#allocation5 + $0x60] sm:$0xff]  ;;  %v668_v23 = vld [vmem:[#allocation5 + $0x78] sm:$0xff]  ;;  %v685_v33 = vld [vmem:[#allocation5 + $0x90] sm:$0xff]  ;;  %s553_s7 = scalar_lea.vmem %s485_s6, 768 }
  0x2c   :  { %v48_v8 = vrot.slane %v637_v5, %v631_v2  ;;  %v52_v11 = vrot.slane %v637_v5, %v633_v3  ;;  %v73_v12 = vrot.slane %v64_v9, %v631_v2  ;;  %v101_v14 = vrot.slane %v645_v10, %v631_v2  ;;  %v678_v29 = vld [vmem:[#allocation2 + $0x5] ss:$8 sm:$0x7]  ;;  %v680_v30 = vld [vmem:[#allocation2 + $0x6] ss:$8 sm:$0x7]  ;;  %p554_p2 = scmp.ne.s32.totalorder %s485_s6, %s553_s7  ;;  %p559_p4 = scmp.lt.s32.totalorder %s553_s7, %s553_s7 }
  0x2d   :  { %v77_v17 = vrot.slane %v64_v9, %v633_v3  ;;  %v56_v18 = vrot.slane %v637_v5, %v635_v4  ;;  %v129_v20 = vrot.slane %v654_v15, %v631_v2  ;;  %v105_v24 = vrot.slane %v645_v10, %v633_v3  ;;  %v689_v35 = vld [vmem:[#allocation2 + $0x7] ss:$8 sm:$0x7]  ;;  %v701_v43 = vld [vmem:[#allocation5 + $0x8] sm:$0xff] }
  0x2e   :  { %v60_v19 = vmul.f32 %v48_v8, %v639_v6  ;;  %v133_v25 = vrot.slane %v654_v15, %v633_v3  ;;  %v85_v26 = vmul.f32 %v73_v12, %v641_v7  ;;  %v113_v27 = vmul.f32 %v101_v14, %v650_v13  ;;  %v703_v44 = vld [vmem:[#allocation5 + $0x20] sm:$0xff]  ;;  %v705_v45 = vld [vmem:[#allocation5 + $0x38] sm:$0xff]  ;;  %v710_v49 = vld [vmem:[#allocation5 + $0x50] sm:$0xff]  ;;  %p560_p5 = por %p559_p4, %p558_p3 }
  0x2f   :  { %v157_v28 = vrot.slane %v664_v21, %v631_v2  ;;  %v81_v31 = vrot.slane %v64_v9, %v635_v4  ;;  %v185_v32 = vrot.slane %v678_v29, %v631_v2  ;;  %v213_v34 = vrot.slane %v680_v30, %v631_v2  ;;  %v712_v50 = vld [vmem:[#allocation5 + $0x68] sm:$0xff]  ;;  %v714_v51 = vld [vmem:[#allocation5 + $0x80] sm:$0xff]  ;;  %v721_v57 = vld [vmem:[#allocation5 + $0x10] sm:$0xff] }
  0x30   :  { %v161_v37 = vrot.slane %v664_v21, %v633_v3  ;;  %v189_v38 = vrot.slane %v678_v29, %v633_v3  ;;  %v88_v39 = vadd.f32 %v85_v26, %v60_v19  ;;  %v141_v40 = vmul.f32 %v129_v20, %v656_v16  ;;  %v726_v62 = vld [vmem:[#allocation5 + $0x98] sm:$0xff]  ;;  %v728_v63 = vld [vmem:[#allocation5 + $0x28] sm:$0xff]  ;;  %v730_v1 = vld [vmem:[#allocation5 + $0xb0] sm:$0xff]  ;;  %p561_p6 = pnand %p560_p5, %p554_p2 }
  0x31   :  { %v169_v41 = vmul.f32 %v157_v28, %v666_v22  ;;  %v241_v42 = vrot.slane %v689_v35, %v631_v2  ;;  %v197_v46 = vmul.f32 %v185_v32, %v668_v23  ;;  %v61_v47 = vmul.f32 %v52_v11, %v701_v43  ;;  %v736_v11 = vld [vmem:[#allocation5 + $0x40] sm:$0xff]  ;;  %v738_v12 = vld [vmem:[#allocation5 + $0x58] sm:$0xff]  ;;  %v744_v20 = vld [vmem:[#allocation5 + $0x70] sm:$0xff] }
  0x32   :  { %v86_v48 = vmul.f32 %v77_v17, %v703_v44  ;;  %v217_v52 = vrot.slane %v680_v30, %v633_v3  ;;  %v116_v53 = vadd.f32 %v113_v27, %v88_v39  ;;  %v225_v54 = vmul.f32 %v213_v34, %v685_v33 }
  0x33   :  { %v253_v55 = vmul.f32 %v241_v42, %v691_v36  ;;  %v114_v56 = vmul.f32 %v105_v24, %v705_v45  ;;  %v142_v59 = vmul.f32 %v133_v25, %v710_v49  ;;  %v170_v60 = vmul.f32 %v161_v37, %v712_v50  ;;  %v748_v25 = vld [vmem:[#allocation5 + $0x88] sm:$0xff]  ;;  %v760_v37 = vld [vmem:[#allocation5 + $0xa0] sm:$0xff] }
  0x34   :  { %v89_v58 = vadd.f32 %v86_v48, %v61_v47  ;;  %v198_v61 = vmul.f32 %v189_v38, %v714_v51  ;;  %v144_v0 = vadd.f32 %v141_v40, %v116_v53  ;;  %v245_v5 = vrot.slane %v689_v35, %v633_v3  ;;  %v762_v38 = vld [vmem:[#allocation2 + $0x1a] ss:$8 sm:$0x7]  ;;  %v772_v53 = vld [vmem:[#allocation2 + $0x1b] ss:$8 sm:$0x7] }
  0x35   :  { %v62_v8 = vmul.f32 %v56_v18, %v721_v57  ;;  %v87_v9 = vmul.f32 %v81_v31, %v728_v63  ;;  %v109_v17 = vrot.slane %v645_v10, %v635_v4  ;;  %v137_v19 = vrot.slane %v654_v15, %v635_v4  ;;  %v753_v31 = vld [vmem:[#allocation2 + $0x18] ss:$8 sm:$0x7]  ;;  %v755_v10 = vld [vmem:[#allocation2 + $0x19] ss:$8 sm:$0x7] }
  0x36   :  { %v117_v14 = vadd.f32 %v114_v56, %v89_v58  ;;  %v165_v24 = vrot.slane %v664_v21, %v635_v4  ;;  %v172_v18 = vadd.f32 %v169_v41, %v144_v0  ;;  %v226_v26 = vmul.f32 %v217_v52, %v726_v62  ;;  %v774_v56 = vld [vmem:[#allocation2 + $0x1c] ss:$8 sm:$0x7] }
  0x37   :  { %v90_v27 = vadd.f32 %v87_v9, %v62_v8  ;;  %v193_v28 = vrot.slane %v678_v29, %v635_v4  ;;  %v254_v15 = vmul.f32 %v245_v5, %v730_v1  ;;  %v115_v34 = vmul.f32 %v109_v17, %v736_v11  ;;  %v783_v8 = vld [vmem:[#allocation5 + $0xb8] sm:$0xff] }
  0x38   :  { %v145_v32 = vadd.f32 %v142_v59, %v117_v14  ;;  %v143_v21 = vmul.f32 %v137_v19, %v738_v12  ;;  %v200_v39 = vadd.f32 %v197_v46, %v172_v18  ;;  %v171_v40 = vmul.f32 %v165_v24, %v744_v20  ;;  %v787_v17 = vld [vmem:[#allocation2 + $0x1e] ss:$8 sm:$0x7] }
  0x39   :  { %v199_v29 = vmul.f32 %v193_v28, %v748_v25  ;;  %v221_v41 = vrot.slane %v680_v30, %v635_v4  ;;  %v118_v47 = vadd.f32 %v115_v34, %v90_v27  ;;  %v271_v48 = vrot.slane %v753_v31, %v631_v2 }
  0x3a   :  { %v173_v42 = vadd.f32 %v170_v60, %v145_v32  ;;  %v295_v52 = vrot.slane %v755_v10, %v631_v2  ;;  %v228_v46 = vadd.f32 %v225_v54, %v200_v39  ;;  %v249_v59 = vrot.slane %v689_v35, %v635_v4  ;;  %v781_v60 = vld [vmem:[#allocation2 + $0x1d] ss:$8 sm:$0x7] }
  0x3b   :  { %v227_v58 = vmul.f32 %v221_v41, %v760_v37  ;;  %v322_v30 = vrot.slane %v762_v38, %v631_v2  ;;  %v146_v5 = vadd.f32 %v143_v21, %v118_v47  ;;  %v283_v9 = vmul.f32 %v271_v48, %v639_v6  ;;  %v796_v6 = vld [vmem:[#allocation2 + $0x1f] ss:$8 sm:$0x7] }
  0x3c   :  { %v201_v0 = vadd.f32 %v198_v61, %v173_v42  ;;  %v307_v14 = vmul.f32 %v295_v52, %v641_v7  ;;  %v256_v54 = vadd.f32 %v253_v55, %v228_v46  ;;  %v349_v35 = vrot.slane %v772_v53, %v631_v2 }
  0x3d   :  { %v334_v19 = vmul.f32 %v322_v30, %v650_v13  ;;  %v376_v24 = vrot.slane %v774_v56, %v631_v2  ;;  %v174_v61 = vadd.f32 %v171_v40, %v146_v5  ;;  %v403_v28 = vrot.slane %v781_v60, %v631_v2 }
  0x3e   :  { %v229_v18 = vadd.f32 %v226_v26, %v201_v0  ;;  %v310_v27 = vadd.f32 %v307_v14, %v283_v9  ;;  %259 = vst [vmem:[#allocation7] sm:$0xff] %v256_v54  ;;  %v255_v7 = vmul.f32 %v249_v59, %v783_v8  ;;  %v361_v55 = vmul.f32 %v349_v35, %v656_v16 }
  0x3f   :  { %v430_v13 = vrot.slane %v787_v17, %v631_v2  ;;  %v202_v34 = vadd.f32 %v199_v29, %v174_v61  ;;  %v388_v26 = vmul.f32 %v376_v24, %v666_v22  ;;  %v415_v39 = vmul.f32 %v403_v28, %v668_v23 }
  0x40   :  { %v257_v32 = vadd.f32 %v254_v15, %v229_v18  ;;  %v337_v21 = vadd.f32 %v334_v19, %v310_v27  ;;  %v457_v40 = vrot.slane %v796_v6, %v631_v2  ;;  %v275_v41 = vrot.slane %v753_v31, %v633_v3 }
  0x41   :  { %v299_v42 = vrot.slane %v755_v10, %v633_v3  ;;  %v230_v16 = vadd.f32 %v227_v58, %v202_v34  ;;  %v326_v15 = vrot.slane %v762_v38, %v633_v3  ;;  %v353_v22 = vrot.slane %v772_v53, %v633_v3 }
  0x42   :  { %260 = vst [vmem:[#allocation7 + $0x8] sm:$0xff] %v257_v32  ;;  %v364_v47 = vadd.f32 %v361_v55, %v337_v21  ;;  %v442_v23 = vmul.f32 %v430_v13, %v685_v33  ;;  %v284_v29 = vmul.f32 %v275_v41, %v701_v43  ;;  %v380_v48 = vrot.slane %v774_v56, %v633_v3 }
  0x43   :  { %v308_v2 = vmul.f32 %v299_v42, %v703_v44  ;;  %v258_v52 = vadd.f32 %v255_v7, %v230_v16  ;;  %v335_v58 = vmul.f32 %v326_v15, %v705_v45  ;;  %v407_v59 = vrot.slane %v781_v60, %v633_v3 }
  0x44   :  { %v391_v46 = vadd.f32 %v388_v26, %v364_v47  ;;  %v469_v30 = vmul.f32 %v457_v40, %v691_v36  ;;  %v362_v5 = vmul.f32 %v353_v22, %v710_v49  ;;  %v389_v43 = vmul.f32 %v380_v48, %v712_v50 }
  0x45   :  { %v311_v0 = vadd.f32 %v308_v2, %v284_v29  ;;  %261 = vst [vmem:[#allocation7 + $0x10] sm:$0xff] %v258_v52  ;;  %v279_v44 = vrot.slane %v753_v31, %v635_v4  ;;  %v303_v9 = vrot.slane %v755_v10, %v635_v4  ;;  %v434_v45 = vrot.slane %v787_v17, %v633_v3 }
  0x46   :  { %v418_v33 = vadd.f32 %v415_v39, %v391_v46  ;;  %v330_v36 = vrot.slane %v762_v38, %v635_v4  ;;  %v357_v49 = vrot.slane %v772_v53, %v635_v4  ;;  %v416_v19 = vmul.f32 %v407_v59, %v714_v51 }
  0x47   :  { %v338_v14 = vadd.f32 %v335_v58, %v311_v0  ;;  %v285_v50 = vmul.f32 %v279_v44, %v721_v57  ;;  %v309_v31 = vmul.f32 %v303_v9, %v728_v63  ;;  %v461_v10 = vrot.slane %v796_v6, %v633_v3 }
  0x48   :  { %v445_v54 = vadd.f32 %v442_v23, %v418_v33  ;;  %v336_v24 = vmul.f32 %v330_v36, %v736_v11  ;;  %v384_v18 = vrot.slane %v774_v56, %v635_v4  ;;  %v363_v53 = vmul.f32 %v357_v49, %v738_v12 }
  0x49   :  { %v365_v35 = vadd.f32 %v362_v5, %v338_v14  ;;  %v312_v61 = vadd.f32 %v309_v31, %v285_v50  ;;  %v411_v51 = vrot.slane %v781_v60, %v635_v4  ;;  %v443_v57 = vmul.f32 %v434_v45, %v726_v62 }
  0x4a   :  { %v472_v38 = vadd.f32 %v469_v30, %v445_v54  ;;  %v390_v28 = vmul.f32 %v384_v18, %v744_v20  ;;  %v438_v3 = vrot.slane %v787_v17, %v635_v4  ;;  %v470_v56 = vmul.f32 %v461_v10, %v730_v1 }
  0x4b   :  { %v392_v27 = vadd.f32 %v389_v43, %v365_v35  ;;  %v339_v63 = vadd.f32 %v336_v24, %v312_v61  ;;  %v417_v55 = vmul.f32 %v411_v51, %v748_v25  ;;  %v465_v12 = vrot.slane %v796_v6, %v635_v4 }
  0x4c   :  { %476 = vst [vmem:[#allocation7 + $0x18] sm:$0xff] %v472_v38  ;;  %v444_v62 = vmul.f32 %v438_v3, %v760_v37 }
  0x4d   :  { %v419_v11 = vadd.f32 %v416_v19, %v392_v27  ;;  %v366_v7 = vadd.f32 %v363_v53, %v339_v63  ;;  %v471_v20 = vmul.f32 %v465_v12, %v783_v8 }
  0x4f   :  { %v446_v60 = vadd.f32 %v443_v57, %v419_v11  ;;  %v393_v13 = vadd.f32 %v390_v28, %v366_v7 }
  0x51   :  { %v473_v32 = vadd.f32 %v470_v56, %v446_v60  ;;  %v420_v34 = vadd.f32 %v417_v55, %v393_v13 }
  0x53   :  { %477 = vst [vmem:[#allocation7 + $0x20] sm:$0xff] %v473_v32  ;;  %v447_v17 = vadd.f32 %v444_v62, %v420_v34 }
  0x55   :  { %v474_v21 = vadd.f32 %v471_v20, %v447_v17 }
  0x57   :  { %478 = vst [vmem:[#allocation7 + $0x28] sm:$0xff] %v474_v21 }
  0x58   :  { %564 = shalt.err (!%p561_p6)
}
  0x59   :  { %s565_s10 = scalar_lea.hbm %s873_s2, 768 }
  0x5a   :  { %p566_p7 = scmp.ne.s32.totalorder %s873_s2, %s565_s10  ;;  %p569_p8 = scmp.lt.u32.totalorder %s565_s10, %s873_s2 }
  0x5c   :  { %p571_p9 = pnand %p569_p8, %p566_p7 }
  0x5e   :  { %574 = shalt.err (!%p571_p9)
}
  0x5f   :  { %490 = dma.vmem_to_hbm [thread:$0]  %s485_s6, 768, %s873_s2, [#allocation4], %s582_s19, %s582_s19, %s583_s20  }
  0x60   :  { %579 = dma.done.wait [#allocation4], 768  }
  0x61   :  { %580 = vsyncadd [#allocation4], 4294966528 }
  0x62   :  { %494 = vsyncpa [#allocation3], 1 }
  0x63   :  { %495 = vsyncpa [#allocation6], 1 }
  0x64   :  { %496 = vsyncpa [#allocation4], 1 }

</bundles_post_ra>
